<compile_context>
chip_gen: v5e
topology: v5e:2x2
jax: 0.10.0
libtpu: 0.0.40
codegen_flags: <defaults>
</compile_context>

<pallas_src>
import functools
import math

import jax
import jax.numpy as jnp
from jax.experimental import pallas as pl
from jax.experimental.pallas import tpu as pltpu

LN_EPS = 1e-5


def _round_up(x, m):
    return ((x + m - 1) // m) * m


def _basic_block_kernel(x_ref, gamma_ref, beta_ref, w_ref, b_ref, out_ref):
    """Fused LayerNorm + Linear + residual for one row-tile.

    x_ref:     (TILE, D)   input rows
    gamma_ref: (1, D)      LayerNorm weight
    beta_ref:  (1, D)      LayerNorm bias
    w_ref:     (D, D)      Linear weight, pre-transposed to [in, out], bf16
    b_ref:     (1, D)      Linear bias
    out_ref:   (TILE, D)   output rows
    """
    x = x_ref[...].astype(jnp.float32)

    # --- LayerNorm over last axis (biased variance, eps=1e-5, like nn.LayerNorm).
    # Kept in f32: elementwise/XLU/EUP work overlaps under the MXU / DMA anyway.
    mean = jnp.mean(x, axis=-1, keepdims=True)
    xc = x - mean
    var = jnp.mean(xc * xc, axis=-1, keepdims=True)
    inv = jax.lax.rsqrt(var + LN_EPS)
    normed = xc * inv * gamma_ref[...].astype(jnp.float32) + beta_ref[...].astype(
        jnp.float32
    )

    # --- main_module: Linear(D -> D), y = normed @ W[in,out] + b  (MXU, bf16 in,
    # f32 accumulate).
    y = jnp.dot(
        normed.astype(w_ref.dtype), w_ref[...], preferred_element_type=jnp.float32
    )
    y = y + b_ref[...].astype(jnp.float32)

    # --- Dropout(p=0.0) == identity; residual add.
    out_ref[...] = (y + x).astype(out_ref.dtype)


@functools.partial(jax.jit, static_argnames=("tile_rows", "matmul_dtype"))
def basic_block_forward(
    x, lengths, ln_gamma, ln_beta, lin_w, lin_b, *, tile_rows=512,
    matmul_dtype=jnp.bfloat16,
):
    """x: [B, T, D]. Returns (output [B, T, D], lengths, []) like the reference."""
    B, T, D = x.shape
    rows = B * T

    # Row tile: big tiles amortize per-step pipeline overhead and feed the MXU
    # tall M panels. Clamp to the (rounded-up) problem size; keep it a multiple
    # of 16 so the tiling is valid for both f32 (8) and bf16 (16) sublane
    # packing.
    sub = 16
    tr = max(sub, min(int(tile_rows), _round_up(rows, sub)))
    tr = _round_up(tr, sub)

    padded_rows = _round_up(rows, tr)
    grid = (padded_rows // tr,)

    x2d = x.reshape(rows, D)
    if padded_rows != rows:
        # Zero-padded tail rows are harmless (LN of zeros is finite) and sliced
        # off after the call.
        x2d = jnp.pad(x2d, ((0, padded_rows - rows), (0, 0)))

    gamma2d = ln_gamma.reshape(1, D)
    beta2d = ln_beta.reshape(1, D)
    # PyTorch Linear stores weight as [out, in] and computes x @ W^T.
    # Pre-transpose once in the wrapper and cast to bf16 for native MXU speed.
    w_t = lin_w.T.astype(matmul_dtype)  # [in, out] = [D, D]
    b2d = lin_b.reshape(1, D)

    # VMEM budget: double-buffered x/out tiles + resident weight (budget 2x in
    # case the pipeline double-buffers it) + params + headroom. Capped at
    # 64 MiB so it is also valid on v7x (64 MiB per TC).
    itemsize_x = jnp.dtype(x.dtype).itemsize
    vmem_bytes = (
        2 * tr * D * itemsize_x                              # x tiles (2 bufs)
        + 2 * tr * D * itemsize_x                            # out tiles (2 bufs)
        + 2 * D * D * jnp.dtype(matmul_dtype).itemsize       # weight (budget 2x)
        + 6 * D * 4                                          # gamma/beta/bias
        + (8 << 20)                                          # headroom
    )
    vmem_bytes = int(min(max(vmem_bytes, 32 << 20), 64 << 20))

    # Weights / LN params have a constant block index over the grid, so the
    # auto-pipeline fetches them once and reuses the buffer on every step.
    const2d = lambda i: (0, 0)

    # TODO(synk): for hidden sizes where the (D, D) weight no longer fits VMEM
    # (roughly D > ~4096 in bf16 on v7x), add N/K grid axes ("arbitrary" K last)
    # with an f32 accumulator scratch and pl.when init/finalize.

    out2d = pl.pallas_call(
        _basic_block_kernel,
        out_shape=jax.ShapeDtypeStruct((padded_rows, D), x.dtype),
        grid_spec=pltpu.PrefetchScalarGridSpec(
            num_scalar_prefetch=0,
            grid=grid,
            in_specs=[
                pl.BlockSpec((tr, D), lambda i: (i, 0)),  # x tile
                pl.BlockSpec((1, D), const2d),            # ln gamma
                pl.BlockSpec((1, D), const2d),            # ln beta
                pl.BlockSpec((D, D), const2d),            # linear W^T (bf16)
                pl.BlockSpec((1, D), const2d),            # linear b
            ],
            out_specs=pl.BlockSpec((tr, D), lambda i: (i, 0)),
        ),
        compiler_params=pltpu.CompilerParams(
            dimension_semantics=("parallel",),
            vmem_limit_bytes=vmem_bytes,
        ),
    )(x2d, gamma2d, beta2d, w_t, b2d)

    output = out2d[:rows].reshape(B, T, D)
    return output, lengths, []


def _reference(x, ln_gamma, ln_beta, lin_w, lin_b):
    """Pure-JAX f32 reference mirroring the PyTorch forward."""
    xf = x.astype(jnp.float32)
    mean = jnp.mean(xf, axis=-1, keepdims=True)
    var = jnp.mean((xf - mean) ** 2, axis=-1, keepdims=True)
    normed = (xf - mean) / jnp.sqrt(var + LN_EPS) * ln_gamma + ln_beta
    y = normed @ lin_w.T + lin_b
    return (y + xf).astype(x.dtype)


if __name__ == "__main__":
    # Small shapes: rows = B*T = 48 -> with tile_rows=32 this exercises a 2-step
    # grid plus a zero-padded tail tile; D=128 keeps the output lane-dense.
    B, T, D = 2, 24, 128

    key = jax.random.PRNGKey(0)
    k_x, k_w, k_b, k_g, k_be = jax.random.split(key, 5)

    x = jax.random.normal(k_x, (B, T, D), dtype=jnp.float32)
    lengths = jnp.full((B,), T, dtype=jnp.int32)

    # Deterministic synthetic parameters (non-trivial LN affine to test it).
    ln_gamma = 1.0 + 0.1 * jax.random.normal(k_g, (D,), dtype=jnp.float32)
    ln_beta = 0.1 * jax.random.normal(k_be, (D,), dtype=jnp.float32)
    lin_w = jax.random.normal(k_w, (D, D), dtype=jnp.float32) * (1.0 / math.sqrt(D))
    lin_b = jax.random.normal(k_b, (D,), dtype=jnp.float32) * 0.01

    ref = _reference(x, ln_gamma, ln_beta, lin_w, lin_b)

    # Multi-step grid + padded tail path.
    out, out_lengths, state = basic_block_forward(
        x, lengths, ln_gamma, ln_beta, lin_w, lin_b, tile_rows=32
    )
    jax.block_until_ready(out)
    assert out.shape == x.shape
    assert state == []
    # bf16 matmul inputs with f32 accumulation -> tolerance loosened vs f32 ref.
    assert jnp.allclose(out, ref, atol=3e-2, rtol=3e-2), (
        f"mismatch (tiled): max|err|={float(jnp.max(jnp.abs(out - ref)))}"
    )

    # Default (large, clamped) tile path: whole problem in one grid step.
    out2, _, _ = basic_block_forward(x, lengths, ln_gamma, ln_beta, lin_w, lin_b)
    jax.block_until_ready(out2)
    assert jnp.allclose(out2, ref, atol=3e-2, rtol=3e-2), (
        f"mismatch (single tile): max|err|={float(jnp.max(jnp.abs(out2 - ref)))}"
    )

    print("KERNEL_OK")
</pallas_src>

<mosaic_0001>
module attributes {stable_mosaic.version = 11 : i64} {
  func.func @_basic_block_kernel(%arg0: i32, %arg1: memref<32x128xf32, #tpu.memory_space<vmem>>, %arg2: memref<1x128xf32, #tpu.memory_space<vmem>>, %arg3: memref<1x128xf32, #tpu.memory_space<vmem>>, %arg4: memref<128x128xbf16, #tpu.memory_space<vmem>>, %arg5: memref<1x128xf32, #tpu.memory_space<vmem>>, %arg6: memref<32x128xf32, #tpu.memory_space<vmem>>) attributes {dimension_semantics = [#tpu.dimension_semantics<parallel>], iteration_bounds = array<i64: 2>, scalar_prefetch = 0 : i64, scratch_operands = 0 : i64, tpu.core_type = #tpu.core_type<tc>, window_params = [{transform_indices = @transform_0, window_bounds = array<i64: 32, 128>}, {pipeline_mode = #tpu.pipeline_mode<synchronous>, transform_indices = @transform_1, window_bounds = array<i64: 1, 128>}, {pipeline_mode = #tpu.pipeline_mode<synchronous>, transform_indices = @transform_2, window_bounds = array<i64: 1, 128>}, {pipeline_mode = #tpu.pipeline_mode<synchronous>, transform_indices = @transform_3, window_bounds = array<i64: 128, 128>}, {pipeline_mode = #tpu.pipeline_mode<synchronous>, transform_indices = @transform_4, window_bounds = array<i64: 1, 128>}, {transform_indices = @transform_5, window_bounds = array<i64: 32, 128>}]} {
    %c0 = arith.constant 0 : index
    %c0_0 = arith.constant 0 : index
    %0 = vector.load %arg1[%c0, %c0_0] : memref<32x128xf32, #tpu.memory_space<vmem>>, vector<32x128xf32>
    %cst = arith.constant dense<0.000000e+00> : vector<32xf32>
    %1 = vector.multi_reduction <add>, %0, %cst [1] : vector<32x128xf32> to vector<32xf32>
    %2 = vector.shape_cast %1 : vector<32xf32> to vector<32x1xf32>
    %cst_1 = arith.constant 1.280000e+02 : f32
    %3 = vector.broadcast %cst_1 : f32 to vector<32x1xf32>
    %4 = arith.divf %2, %3 : vector<32x1xf32>
    %5 = vector.broadcast %4 : vector<32x1xf32> to vector<32x128xf32>
    %6 = arith.subf %0, %5 : vector<32x128xf32>
    %7 = arith.mulf %6, %6 : vector<32x128xf32>
    %cst_2 = arith.constant dense<0.000000e+00> : vector<32xf32>
    %8 = vector.multi_reduction <add>, %7, %cst_2 [1] : vector<32x128xf32> to vector<32xf32>
    %9 = vector.shape_cast %8 : vector<32xf32> to vector<32x1xf32>
    %cst_3 = arith.constant 1.280000e+02 : f32
    %10 = vector.broadcast %cst_3 : f32 to vector<32x1xf32>
    %11 = arith.divf %9, %10 : vector<32x1xf32>
    %cst_4 = arith.constant 9.99999974E-6 : f32
    %12 = vector.broadcast %cst_4 : f32 to vector<32x1xf32>
    %13 = arith.addf %11, %12 : vector<32x1xf32>
    %14 = math.rsqrt %13 : vector<32x1xf32>
    %15 = vector.broadcast %14 : vector<32x1xf32> to vector<32x128xf32>
    %16 = arith.mulf %6, %15 : vector<32x128xf32>
    %c0_5 = arith.constant 0 : index
    %c0_6 = arith.constant 0 : index
    %17 = vector.load %arg2[%c0_5, %c0_6] : memref<1x128xf32, #tpu.memory_space<vmem>>, vector<1x128xf32>
    %18 = vector.broadcast %17 : vector<1x128xf32> to vector<32x128xf32>
    %19 = arith.mulf %16, %18 : vector<32x128xf32>
    %c0_7 = arith.constant 0 : index
    %c0_8 = arith.constant 0 : index
    %20 = vector.load %arg3[%c0_7, %c0_8] : memref<1x128xf32, #tpu.memory_space<vmem>>, vector<1x128xf32>
    %21 = vector.broadcast %20 : vector<1x128xf32> to vector<32x128xf32>
    %22 = arith.addf %19, %21 : vector<32x128xf32>
    %23 = arith.truncf %22 : vector<32x128xf32> to vector<32x128xbf16>
    %c0_9 = arith.constant 0 : index
    %c0_10 = arith.constant 0 : index
    %24 = vector.load %arg4[%c0_9, %c0_10] : memref<128x128xbf16, #tpu.memory_space<vmem>>, vector<128x128xbf16>
    %cst_11 = arith.constant dense<0.000000e+00> : vector<32x128xf32>
    %25 = tpu.matmul %23, %24, %cst_11 {dimension_numbers = #tpu.dot_dimension_numbers<[1], [0], [0], [1], [0, 0, 1, 1], [], []>} : vector<32x128xbf16>, vector<128x128xbf16>, vector<32x128xf32> -> vector<32x128xf32>
    %c0_12 = arith.constant 0 : index
    %c0_13 = arith.constant 0 : index
    %26 = vector.load %arg5[%c0_12, %c0_13] : memref<1x128xf32, #tpu.memory_space<vmem>>, vector<1x128xf32>
    %27 = vector.broadcast %26 : vector<1x128xf32> to vector<32x128xf32>
    %28 = arith.addf %25, %27 : vector<32x128xf32>
    %29 = arith.addf %28, %0 : vector<32x128xf32>
    %c0_14 = arith.constant 0 : index
    %c0_15 = arith.constant 0 : index
    %30 = vector.load %arg6[%c0_14, %c0_15] : memref<32x128xf32, #tpu.memory_space<vmem>>, vector<32x128xf32>
    tpu.vector_store %arg6[%c0_14, %c0_15], %29 {strides = array<i32>} : memref<32x128xf32, #tpu.memory_space<vmem>>, vector<32x128xf32>,
    return
  }
  func.func @transform_0(%arg0: i32) -> (i32, i32) {
    %c0_i32 = arith.constant 0 : i32
    %c0_i32_0 = arith.constant 0 : i32
    return %arg0, %c0_i32 : i32, i32
  }
  func.func @transform_1(%arg0: i32) -> (i32, i32) {
    %c0_i32 = arith.constant 0 : i32
    %c0_i32_0 = arith.constant 0 : i32
    %c0_i32_1 = arith.constant 0 : i32
    return %c0_i32, %c0_i32_0 : i32, i32
  }
  func.func @transform_2(%arg0: i32) -> (i32, i32) {
    %c0_i32 = arith.constant 0 : i32
    %c0_i32_0 = arith.constant 0 : i32
    %c0_i32_1 = arith.constant 0 : i32
    return %c0_i32, %c0_i32_0 : i32, i32
  }
  func.func @transform_3(%arg0: i32) -> (i32, i32) {
    %c0_i32 = arith.constant 0 : i32
    %c0_i32_0 = arith.constant 0 : i32
    %c0_i32_1 = arith.constant 0 : i32
    return %c0_i32, %c0_i32_0 : i32, i32
  }
  func.func @transform_4(%arg0: i32) -> (i32, i32) {
    %c0_i32 = arith.constant 0 : i32
    %c0_i32_0 = arith.constant 0 : i32
    %c0_i32_1 = arith.constant 0 : i32
    return %c0_i32, %c0_i32_0 : i32, i32
  }
  func.func @transform_5(%arg0: i32) -> (i32, i32) {
    %c0_i32 = arith.constant 0 : i32
    %c0_i32_0 = arith.constant 0 : i32
    return %arg0, %c0_i32 : i32, i32
  }
}

</mosaic_0001>

<bundles_post_ra>
// kernel: basic_block_forward.1
= control target key start
LH: loop header
LB: loop body
LE: loop exit
PB: predicated region body
PF: predicated region fallthrough
CT: control target
= control target key end

     0   :  { %s608_s18 = smov 0   ;;  %s705_s0 = inlined_call_operand.vmem [shape: f32[64,128], index: 0, kind: input, shape index: {}]   ;;  %s706_s1 = inlined_call_operand.vmem [shape: f32[1,128], index: 1, kind: input, shape index: {}]   ;;  %s707_s2 = inlined_call_operand.vmem [shape: f32[1,128], index: 2, kind: input, shape index: {}]   ;;  %s708_s3 = inlined_call_operand.vmem [shape: bf16[128,128], index: 3, kind: input, shape index: {}]   ;;  %s709_s4 = inlined_call_operand.vmem [shape: f32[1,128], index: 4, kind: input, shape index: {}]   ;;  %s710_s5 = inlined_call_operand.vmem [shape: f32[64,128], index: 5, kind: output, shape index: {}]  }
   0x1 LB: > { %s488_s19 = sadd.s32 4294967295, %s575_s18   ;;  %p492_p0 = scmp.ge.s32.totalorder %s575_s18, 1  ;;  %s575_s18 = sphi %s608_s18, %s15_s18  }
   0x2   : > { %p188_p1 = scmp.lt.s32.totalorder %s575_s18, 3 }
   0x4   : > { %p189_p2 = pnand %p492_p0, %p188_p1 }
   0x5   : > { %s493_s20 = sshll.u32 (!%p189_p2), %s488_s19, 2 }
   0x6   : > { %192 = sbr.rel (%p189_p2) target bundleno = 431 (0x1af), region = 40  ;;  %p217_p3 = scmp.lt.s32.totalorder (!%p189_p2), %s493_s20, 7 }
   0xb   : > { %s712_s20 = smov (!%p217_p3, %s493_s20), 7  ;;  %v577_v4 = vmov 128.0   ;;  %v538_v27 = vld [vmem:[%s708_s3 + $0x38] sm:$0xff]  ;;  %v537_v28 = vld [vmem:[%s708_s3 + $0x30] sm:$0xff]  ;;  %v536_v29 = vld [vmem:[%s708_s3 + $0x28] sm:$0xff] }
   0xc   : > { %s494_s21 = sshll.u32 %s712_s20, 3  ;;  %559 = vrcp.f32 %v577_v4  ;;  %405 = vmatpush.bf16.msra.mxu0 %v538_v27  ;;  %539 = vmatpush.bf16.msra.mxu1 %v538_v27  ;;  %v535_v30 = vld [vmem:[%s708_s3 + $0x20] sm:$0xff]  ;;  %v534_v31 = vld [vmem:[%s708_s3 + $0x18] sm:$0xff]  ;;  %v533_v32 = vld [vmem:[%s708_s3 + $0x10] sm:$0xff] }
   0xd   : > { %s220_s24 = scalar_lea.vmem %s705_s0, %s494_s21  ;;  %v532_v33 = vld [vmem:[%s708_s3 + $0x8] sm:$0xff]  ;;  %v531_v38 = vld [vmem:[%s708_s3] sm:$0xff]  ;;  %s226_s27 = scalar_lea.vmem %s710_s5, %s494_s21 }
   0xe   : > { %v624_v0 = vld [vmem:[%s220_s24 + $0x10] sm:$0xff]  ;;  %v626_v1 = vld [vmem:[%s220_s24] sm:$0xff]  ;;  %v630_v2 = vld [vmem:[%s220_s24 + $0x18] sm:$0xff] }
   0xf   : > { %236 = vadd.xlane.f32.xlu1 %v624_v0  ;;  %232 = vadd.xlane.f32.xlu0 %v626_v1  ;;  %v632_v3 = vld [vmem:[%s220_s24 + $0x8] sm:$0xff] }
  0x10   : > { %406 = vmatpush.bf16.msra.mxu0 %v537_v28  ;;  %540 = vmatpush.bf16.msra.mxu1 %v537_v28 }
  0x12   : > { %v560_v5 = vpop.eup %559 }
  0x13   : > { %v241_v6 = vmul.f32 128.0, %v560_v5  ;;  %vm245_vm0 = vweird.f32 %v560_v5 }
  0x14   : > { %407 = vmatpush.bf16.msra.mxu0 %v536_v29  ;;  %541 = vmatpush.bf16.msra.mxu1 %v536_v29 }
  0x15   : > { %v242_v7 = vsub.f32 1.0, %v241_v6 }
  0x17   : > { %238 = vadd.xlane.f32.xlu1 %v630_v2  ;;  %234 = vadd.xlane.f32.xlu0 %v632_v3  ;;  %v243_v8 = vmul.f32 %v560_v5, %v242_v7 }
  0x18   : > { %408 = vmatpush.bf16.msra.mxu0 %v535_v30  ;;  %542 = vmatpush.bf16.msra.mxu1 %v535_v30 }
  0x19   : > { %v244_v9 = vadd.f32 %v560_v5, %v243_v8 }
  0x1b   : > { %v246_v10 = vsel %vm245_vm0, %v560_v5, %v244_v9 }
  0x1c   : > { %409 = vmatpush.bf16.msra.mxu0 %v534_v31  ;;  %543 = vmatpush.bf16.msra.mxu1 %v534_v31 }
  0x20   : > { %410 = vmatpush.bf16.msra.mxu0 %v533_v32  ;;  %544 = vmatpush.bf16.msra.mxu1 %v533_v32 }
  0x24   : > { %411 = vmatpush.bf16.msra.mxu0 %v532_v33  ;;  %545 = vmatpush.bf16.msra.mxu1 %v532_v33  ;;  %v558_v33 = vld [vmem:[%s709_s4] ss:$0 sm:$0xff] }
  0x28   : > { %412 = vmatpush.bf16.msra.mxu0 %v531_v38  ;;  %546 = vmatpush.bf16.msra.mxu1 %v531_v38 }
  0x82   : > { %v237_v11 = vpop.xlane.xlu1 %236  ;;  %v233_v12 = vpop.xlane.xlu0 %232 }
  0x83   : > { %v249_v13 = vmul.f32 %v246_v10, %v237_v11  ;;  %v247_v14 = vmul.f32 %v246_v10, %v233_v12  ;;  %v556_v11 = vld [vmem:[%s706_s1] ss:$0 sm:$0xff] }
  0x85   : > { %v637_v15 = vsub.f32 %v624_v0, %v249_v13  ;;  %v640_v16 = vsub.f32 %v626_v1, %v247_v14 }
  0x87   : > { %v257_v17 = vmul.f32 %v637_v15, %v637_v15  ;;  %v255_v18 = vmul.f32 %v640_v16, %v640_v16 }
  0x89   : > { %263 = vadd.xlane.f32.xlu0 %v257_v17  ;;  %259 = vadd.xlane.f32.xlu2 %v255_v18 }
  0x8a   : > { %v239_v19 = vpop.xlane.xlu1 %238  ;;  %v235_v20 = vpop.xlane.xlu0 %234 }
  0x8b   : > { %v250_v21 = vmul.f32 %v246_v10, %v239_v19  ;;  %v248_v22 = vmul.f32 %v246_v10, %v235_v20  ;;  %v557_v20 = vld [vmem:[%s707_s2] ss:$0 sm:$0xff] }
  0x8d   : > { %v647_v23 = vsub.f32 %v630_v2, %v250_v21  ;;  %v650_v24 = vsub.f32 %v632_v3, %v248_v22 }
  0x8f   : > { %v258_v25 = vmul.f32 %v647_v23, %v647_v23  ;;  %v256_v26 = vmul.f32 %v650_v24, %v650_v24 }
  0x91   : > { %265 = vadd.xlane.f32.xlu1 %v258_v25  ;;  %261 = vadd.xlane.f32.xlu2 %v256_v26 }
  0xfc   : > { %v260_v34 = vpop.xlane.xlu2 %259  ;;  %v264_v35 = vpop.xlane.xlu0 %263 }
  0xfd   : > { %v267_v36 = vmul.f32 %v260_v34, %v246_v10  ;;  %v269_v37 = vmul.f32 %v264_v35, %v246_v10 }
  0xff   : > { %v271_v39 = vadd.f32 1e-05, %v267_v36  ;;  %v273_v40 = vadd.f32 1e-05, %v269_v37 }
 0x101   : > { %561 = vrsqrt.f32 %v271_v39  ;;  %vm301_vm3 = vweird.f32 %v273_v40  ;;  %vm281_vm4 = vweird.f32 %v271_v39 }
 0x102   : > { %563 = vrsqrt.f32 %v273_v40 }
 0x104   : > { %v266_v41 = vpop.xlane.xlu1 %265  ;;  %v262_v42 = vpop.xlane.xlu2 %261 }
 0x105   : > { %v270_v43 = vmul.f32 %v266_v41, %v246_v10  ;;  %v268_v44 = vmul.f32 %v262_v42, %v246_v10 }
 0x107   : > { %v562_v45 = vpop.eup %561  ;;  %v274_v46 = vadd.f32 1e-05, %v270_v43  ;;  %v272_v47 = vadd.f32 1e-05, %v268_v44 }
 0x108   : > { %v564_v48 = vpop.eup %563  ;;  %v276_v49 = vmul.f32 %v562_v45, %v271_v39  ;;  %vm282_vm2 = vweird.f32 %v562_v45 }
 0x109   : > { %v296_v50 = vmul.f32 %v564_v48, %v273_v40  ;;  %565 = vrsqrt.f32 %v274_v46  ;;  %vm302_vm1 = vweird.f32 %v564_v48  ;;  %vm283_vm6 = vmor %vm281_vm4, %vm282_vm2  ;;  %vm311_vm9 = vweird.f32 %v274_v46 }
 0x10a   : > { %v277_v51 = vmul.f32 %v562_v45, %v276_v49  ;;  %567 = vrsqrt.f32 %v272_v47  ;;  %vm303_vm5 = vmor %vm301_vm3, %vm302_vm1  ;;  %vm291_vm11 = vweird.f32 %v272_v47 }
 0x10b   : > { %v297_v52 = vmul.f32 %v564_v48, %v296_v50 }
 0x10c   : > { %v278_v53 = vmul.f32 0.5, %v277_v51 }
 0x10d   : > { %v298_v54 = vmul.f32 0.5, %v297_v52 }
 0x10e   : > { %v279_v55 = vsub.f32 1.5, %v278_v53 }
 0x10f   : > { %v566_v56 = vpop.eup %565  ;;  %v299_v57 = vsub.f32 1.5, %v298_v54 }
 0x110   : > { %v568_v58 = vpop.eup %567  ;;  %v306_v59 = vmul.f32 %v566_v56, %v274_v46  ;;  %v280_v60 = vmul.f32 %v562_v45, %v279_v55  ;;  %vm312_vm7 = vweird.f32 %v566_v56 }
 0x111   : > { %v300_v61 = vmul.f32 %v564_v48, %v299_v57  ;;  %v286_v62 = vmul.f32 %v568_v58, %v272_v47  ;;  %vm292_vm8 = vweird.f32 %v568_v58  ;;  %vm313_vm10 = vmor %vm311_vm9, %vm312_vm7 }
 0x112   : > { %v307_v63 = vmul.f32 %v566_v56, %v306_v59  ;;  %v284_v8 = vsel %vm283_vm6, %v562_v45, %v280_v60  ;;  %vm293_vm12 = vmor %vm291_vm11, %vm292_vm8 }
 0x113   : > { %v287_v4 = vmul.f32 %v568_v58, %v286_v62  ;;  %v304_v6 = vsel %vm303_vm5, %v564_v48, %v300_v61  ;;  %v315_v14 = vmul.f32 %v284_v8, %v640_v16 }
 0x114   : > { %v308_v5 = vmul.f32 0.5, %v307_v63  ;;  %v317_v12 = vmul.f32 %v304_v6, %v637_v15 }
 0x115   : > { %v288_v7 = vmul.f32 0.5, %v287_v4  ;;  %v323_v15 = vmul.f32 %v556_v11, %v315_v14 }
 0x116   : > { %v309_v9 = vsub.f32 1.5, %v308_v5  ;;  %v325_v22 = vmul.f32 %v556_v11, %v317_v12 }
 0x117   : > { %v289_v10 = vsub.f32 1.5, %v288_v7  ;;  %v331_v29 = vadd.f32 %v557_v20, %v323_v15 }
 0x118   : > { %v310_v13 = vmul.f32 %v566_v56, %v309_v9  ;;  %v333_v16 = vadd.f32 %v557_v20, %v325_v22 }
 0x119   : > { %v290_v17 = vmul.f32 %v568_v58, %v289_v10 }
 0x11a   : > { %v314_v18 = vsel %vm313_vm10, %v566_v56, %v310_v13 }
 0x11b   : > { %v294_v19 = vsel %vm293_vm12, %v568_v58, %v290_v17  ;;  %v318_v21 = vmul.f32 %v314_v18, %v647_v23 }
 0x11c   : > { %v316_v25 = vmul.f32 %v294_v19, %v650_v24 }
 0x11d   : > { %v326_v26 = vmul.f32 %v556_v11, %v318_v21 }
 0x11e   : > { %v324_v27 = vmul.f32 %v556_v11, %v316_v25 }
 0x11f   : > { %v334_v28 = vadd.f32 %v557_v20, %v326_v26 }
 0x120   : > { %v332_v30 = vadd.f32 %v557_v20, %v324_v27 }
 0x121   : > { %v336_v31 = vpack.c.bf16 %v334_v28, %v333_v16 }
 0x122   : > { %v335_v32 = vpack.c.bf16 %v332_v30, %v331_v29 }
 0x123   : > { %418 = vmatmul.bf16.vlgmr.msra.gmra.mxu1 %v336_v31 }
 0x124   : > { %413 = vmatmul.bf16.vlgmr.msra.gmra.mxu0 %v335_v32 }
 0x1a0   : > { %v419_v23 = vpop.f32.mrf.mxu1 }
 0x1a1   : > { %v414_v34 = vpop.f32.mrf.mxu0  ;;  %v420_v37 = vadd.f32 %v558_v33, %v419_v23 }
 0x1a2   : > { %v415_v35 = vadd.f32 %v558_v33, %v414_v34 }
 0x1a3   : > { %v426_v42 = vadd.f32 %v420_v37, %v624_v0 }
 0x1a4   : > { %v424_v24 = vadd.f32 %v415_v35, %v626_v1 }
 0x1a5   : > { %430 = vst [vmem:[%s226_s27 + $0x10] sm:$0xff] %v426_v42 }
 0x1a6   : > { %428 = vst [vmem:[%s226_s27] sm:$0xff] %v424_v24 }
 0x1a8   : > { %v421_v36 = vpop.f32.mrf.mxu1 }
 0x1a9   : > { %v416_v38 = vpop.f32.mrf.mxu0  ;;  %v422_v40 = vadd.f32 %v558_v33, %v421_v36 }
 0x1aa   : > { %v417_v39 = vadd.f32 %v558_v33, %v416_v38 }
 0x1ab   : > { %v427_v43 = vadd.f32 %v422_v40, %v630_v2 }
 0x1ac   : > { %v425_v41 = vadd.f32 %v417_v39, %v632_v3 }
 0x1ad   : > { %431 = vst [vmem:[%s226_s27 + $0x18] sm:$0xff] %v427_v43 }
 0x1ae   : > { %429 = vst [vmem:[%s226_s27 + $0x8] sm:$0xff] %v425_v41 }
 0x1af PF: > { %s15_s18 = sadd.s32 1, %s575_s18  }
 0x1b0   : > { %p12_p4 = scmp.ge.s32.totalorder %s15_s18, 4  }
 0x1b2   :  { %14 = sbr.rel (!%p12_p4) target bundleno = 1 (0x1), region = 70 }

</bundles_post_ra>
